<compile_context>
chip_gen: v6e
topology: v6e:2x2x1
jax: 0.10.0
libtpu: 0.0.40
codegen_flags: <defaults>
</compile_context>

<pallas_src>
import jax
import jax.numpy as jnp
from jax import lax
from jax.experimental import pallas as pl
from jax.experimental.pallas import tpu as pltpu


# ---------------------------------------------------------------------------
# helpers
# ---------------------------------------------------------------------------

def _round_up(n, m):
    return ((n + m - 1) // m) * m


def _sublane_align(dtype):
    """Packed-sublane alignment for second-to-last block dims (dtype-aware)."""
    return {2: 16, 1: 32}.get(jnp.dtype(dtype).itemsize, 8)


def _pick_tile(dim, target, align):
    """Largest tile <= target that divides `dim` and is a multiple of `align`;
    falls back to the full dimension (full-extent blocks are always legal)."""
    if dim <= target:
        return dim
    t = (target // align) * align
    while t >= align:
        if dim % t == 0:
            return t
        t -= align
    return dim


def _vmem_budget():
    """Usable VMEM (bytes) on this generation, minus headroom."""
    cap = 64 << 20                      # conservative fallback (v7x: 64 MiB/TC)
    try:
        info = pltpu.get_tpu_info()
        c = getattr(info, "vmem_capacity_bytes", None)
        if c:
            cap = int(c)
    except Exception:
        pass
    return max(cap - (16 << 20), 32 << 20)


# ---------------------------------------------------------------------------
# generic lane-dense linear kernel:  y = x @ W + b
# (used for the QKV projection and, when un-fused, the output projection)
# ---------------------------------------------------------------------------

def _linear_kernel(x_ref, w_ref, b_ref, o_ref):
    acc = jnp.dot(x_ref[...], w_ref[...], preferred_element_type=jnp.float32)
    o_ref[...] = (acc + b_ref[...]).astype(o_ref.dtype)


def _linear(x, w, b, *, out_dtype, row_tile, col_tile, budget):
    """x: [M, K], w: [K, N], b: [1, N] f32 -> [M, N] lane-dense."""
    M, K = x.shape
    N = w.shape[1]
    isz = jnp.dtype(x.dtype).itemsize
    osz = jnp.dtype(out_dtype).itemsize
    sub = _sublane_align(x.dtype)

    tn = _pick_tile(N, col_tile, 128)
    tm_target = max(int(row_tile), sub)
    while True:
        tm = _pick_tile(M, tm_target, sub)
        ws = 2 * ((tm * K + K * tn) * isz + tm * tn * osz) + 8 * tn
        if ws <= budget or tm_target <= sub:
            break
        tm_target = max(sub, tm_target // 2)
    vmem_limit = int(min(max(ws + (4 << 20), 32 << 20), budget))

    return pl.pallas_call(
        _linear_kernel,
        out_shape=jax.ShapeDtypeStruct((M, N), out_dtype),
        grid_spec=pltpu.PrefetchScalarGridSpec(
            num_scalar_prefetch=0,
            grid=(M // tm, N // tn),
            in_specs=[
                pl.BlockSpec((tm, K), lambda i, j: (i, 0)),
                pl.BlockSpec((K, tn), lambda i, j: (0, j)),
                pl.BlockSpec((1, tn), lambda i, j: (0, j)),
            ],
            out_specs=pl.BlockSpec((tm, tn), lambda i, j: (i, j)),
        ),
        compiler_params=pltpu.CompilerParams(
            dimension_semantics=("parallel", "parallel"),
            vmem_limit_bytes=vmem_limit),
    )(x, w, b)


# ---------------------------------------------------------------------------
# flash attention (online softmax) with optional fused output projection
# ---------------------------------------------------------------------------

def _make_attn_kernel(fuse_proj, scale, neg_big=-1e30):
    def kernel(q_ref, k_ref, v_ref, *rest):
        if fuse_proj:
            wp_ref, bp_ref, y_ref, acc_sc, m_sc, l_sc = rest
        else:
            y_ref, acc_sc, m_sc, l_sc = rest
        H = q_ref.shape[1]
        tq = q_ref.shape[2]
        tk = k_ref.shape[2]

        qi = pl.program_id(1)
        ki = pl.program_id(2)
        nk = pl.num_programs(2)
        q_start = qi * tq
        k_start = ki * tk

        @pl.when(ki == 0)
        def _init():
            m_sc[...] = jnp.full_like(m_sc, neg_big)
            l_sc[...] = jnp.zeros_like(l_sc)
            acc_sc[...] = jnp.zeros_like(acc_sc)

        # Skip kv tiles entirely above the causal diagonal (their DMA block
        # index is clamped in the wrapper so no fresh copy is issued either).
        @pl.when(k_start <= q_start + (tq - 1))
        def _compute():
            q = q_ref[0]                                   # [H, tq, D]
            k = k_ref[0]                                   # [H, tk, D]
            v = v_ref[0]                                   # [H, tk, D]
            s = jnp.einsum("hqd,hkd->hqk", q, k,
                           preferred_element_type=jnp.float32)
            s = s * scale                                  # scale once, in f32

            def _apply_mask(sc):
                row = q_start + lax.broadcasted_iota(jnp.int32, (tq, tk), 0)
                col = k_start + lax.broadcasted_iota(jnp.int32, (tq, tk), 1)
                return jnp.where((row >= col)[None, :, :], sc, neg_big)

            # Only tiles straddling the diagonal need the iota mask.
            s = lax.cond(k_start + (tk - 1) > q_start, _apply_mask,
                         lambda sc: sc, s)

            m_prev = m_sc[...]                             # [H, tq]
            m_new = jnp.maximum(m_prev, jnp.max(s, axis=-1))
            alpha = jnp.exp(m_prev - m_new)                # [H, tq]
            p = jnp.exp(s - m_new[:, :, None])             # [H, tq, tk]
            l_sc[...] = alpha * l_sc[...] + jnp.sum(p, axis=-1)
            acc_sc[...] = alpha[:, :, None] * acc_sc[...] + jnp.einsum(
                "hqk,hkd->hqd", p.astype(v.dtype), v,
                preferred_element_type=jnp.float32)
            m_sc[...] = m_new

        @pl.when(ki == nk - 1)
        def _finalize():
            inv_l = pl.reciprocal(l_sc[...], approx=True)          # EUP vrcp
            o = acc_sc[...] * inv_l[:, :, None]                    # [H, tq, D]
            # Merge heads once per q tile -> lane-dense [tq, E].
            o2 = jnp.concatenate([o[h] for h in range(H)], axis=-1)
            if fuse_proj:
                # One K=E matmul (full MXU width) instead of H K=D matmuls.
                y = jnp.dot(o2.astype(wp_ref.dtype), wp_ref[...],
                            preferred_element_type=jnp.float32) + bp_ref[...]
                y_ref[0] = y.astype(y_ref.dtype)
            else:
                y_ref[0] = o2.astype(y_ref.dtype)

    return kernel


# ---------------------------------------------------------------------------
# Wrapper
# ---------------------------------------------------------------------------

def causal_self_attention(x, w_qkv, b_qkv, w_proj, b_proj, *, num_heads,
                          compute_dtype=None, attn_tile=256,
                          qkv_row_tile=1024, qkv_col_tile=512,
                          fuse_proj=None):
    """x: [B, S, E]; w_qkv: [E, 3E] (y = x @ W, i.e. PyTorch weight transposed);
    b_qkv: [3E]; w_proj: [E, E]; b_proj: [E].
    Returns (y [B, S, E], (k, v) each [B, H, S, D]) like the PyTorch module."""
    # TODO(synk): the optional `mask` and `cache` arguments of the PyTorch
    # forward are not wired through; only the default causal / no-cache path.
    B, S, E = x.shape
    H = num_heads
    assert E % H == 0
    D = E // H
    cdt = jnp.dtype(compute_dtype) if compute_dtype is not None else jnp.dtype(x.dtype)
    isz = cdt.itemsize
    osz = jnp.dtype(x.dtype).itemsize
    sub = _sublane_align(cdt)
    budget = _vmem_budget()

    # ---- attention tile choice; pad S when it has no friendly divisor -------
    ts = min(int(attn_tile), _round_up(S, sub))
    ts = max(_round_up(ts, sub), sub)

    def attn_ws(t, with_wp):
        ws = 2 * 3 * t * E * isz            # q, k, v blocks (double-buffered)
        ws += 2 * t * E * osz               # output block (double-buffered)
        ws += t * E * 4 + 2 * H * t * 4     # f32 acc + m + l scratch
        if with_wp:
            ws += E * E * isz + 4 * E       # single-buffered W_proj + bias
        return ws + (2 << 20)

    if fuse_proj is None:
        fuse = attn_ws(ts, True) <= budget          # un-fuse when W_proj is too big
    else:
        fuse = bool(fuse_proj)
    while attn_ws(ts, fuse) > budget and ts > sub:
        ts = max(sub, ((ts // 2) // sub) * sub)
    S_pad = _round_up(S, ts)

    x_in = x if S_pad == S else jnp.pad(x, ((0, 0), (0, S_pad - S), (0, 0)))

    # ---- stage 1: qkv = x @ W_qkv + b over [B*S, E] rows (big row tiles) ----
    xc = x_in.reshape(B * S_pad, E).astype(cdt)
    wq = w_qkv.astype(cdt)
    bq = b_qkv.reshape(1, 3 * E).astype(jnp.float32)
    qkv = _linear(xc, wq, bq, out_dtype=cdt, row_tile=qkv_row_tile,
                  col_tile=qkv_col_tile, budget=budget)

    # ---- single fused head-split relayout: [B*S, 3E] -> [3, B, H, S, D] -----
    qkv = qkv.reshape(B, S_pad, 3, H, D).transpose(2, 0, 3, 1, 4)
    qh, kh, vh = qkv[0], qkv[1], qkv[2]

    # ---- stage 2: flash attention (+ optionally fused output projection) ----
    wp_c = w_proj.astype(cdt)
    bp_f = b_proj.reshape(1, E).astype(jnp.float32)
    scale = 1.0 / float(D) ** 0.5
    nq = S_pad // ts
    out_dtype = x.dtype if fuse else cdt
    vmem2 = int(min(max(attn_ws(ts, fuse) + (4 << 20), 32 << 20), budget))

    def kv_index(b, qi, ki):
        # Fully-masked kv tiles are skipped in the kernel; clamp their block
        # index to the diagonal tile so Pallas issues no fresh DMA for them.
        return (b, 0, jnp.minimum(ki, qi), 0)

    def run_attention(single_buffer_w):
        wmode = dict(pipeline_mode=pl.Buffered(1)) if single_buffer_w else {}
        in_specs = [
            pl.BlockSpec((1, H, ts, D), lambda b, qi, ki: (b, 0, qi, 0)),
            pl.BlockSpec((1, H, ts, D), kv_index),
            pl.BlockSpec((1, H, ts, D), kv_index),
        ]
        args = [qh, kh, vh]
        if fuse:
            in_specs += [
                pl.BlockSpec((E, E), lambda b, qi, ki: (0, 0), **wmode),
                pl.BlockSpec((1, E), lambda b, qi, ki: (0, 0), **wmode),
            ]
            args += [wp_c, bp_f]
        return pl.pallas_call(
            _make_attn_kernel(fuse, scale),
            out_shape=jax.ShapeDtypeStruct((B, S_pad, E), out_dtype),
            grid_spec=pltpu.PrefetchScalarGridSpec(
                num_scalar_prefetch=0,
                grid=(B, nq, nq),
                in_specs=in_specs,
                out_specs=pl.BlockSpec((1, ts, E), lambda b, qi, ki: (b, qi, 0)),
                scratch_shapes=[
                    pltpu.VMEM((H, ts, D), jnp.float32),   # output accumulator
                    pltpu.VMEM((H, ts), jnp.float32),      # running max (lane-dense)
                    pltpu.VMEM((H, ts), jnp.float32),      # running sum (lane-dense)
                ],
            ),
            compiler_params=pltpu.CompilerParams(
                dimension_semantics=("parallel", "parallel", "arbitrary"),
                vmem_limit_bytes=vmem2),
        )(*args)

    try:
        attn_out = run_attention(single_buffer_w=fuse)
    except Exception:
        # pl.Buffered(1) support can vary across JAX versions; fall back to the
        # default (double-buffered) weight residency rather than failing.
        attn_out = run_attention(single_buffer_w=False)

    # ---- stage 3 (only when the E x E weight does not fit fused in VMEM) ----
    if fuse:
        y = attn_out
    else:
        y = _linear(attn_out.reshape(B * S_pad, E), wp_c, bp_f,
                    out_dtype=x.dtype, row_tile=qkv_row_tile,
                    col_tile=qkv_col_tile, budget=budget).reshape(B, S_pad, E)

    if S_pad != S:
        y = y[:, :S]
        kh = kh[:, :, :S]
        vh = vh[:, :, :S]

    # NOTE: when compute_dtype != x.dtype the returned caches carry compute
    # precision (cast back to x.dtype), like the QKV matmul itself.
    return y, (kh.astype(x.dtype), vh.astype(x.dtype))


# ---------------------------------------------------------------------------
# Pure-JAX reference (mirrors the PyTorch module's default path)
# ---------------------------------------------------------------------------

def _reference(x, w_qkv, b_qkv, w_proj, b_proj, num_heads):
    B, S, E = x.shape
    D = E // num_heads
    qkv = x @ w_qkv + b_qkv
    q, k, v = jnp.split(qkv, 3, axis=-1)

    def split_heads(t):
        return t.reshape(B, S, num_heads, D).transpose(0, 2, 1, 3)

    q, k, v = map(split_heads, (q, k, v))
    attn = (q @ k.transpose(0, 1, 3, 2)) / jnp.sqrt(jnp.float32(D))
    causal = jnp.tril(jnp.ones((S, S), dtype=bool))
    attn = jnp.where(causal[None, None], attn, -jnp.inf)
    attn = jax.nn.softmax(attn, axis=-1)
    y = attn @ v
    y = y.transpose(0, 2, 1, 3).reshape(B, S, E)
    return y @ w_proj + b_proj, (k, v)


if __name__ == "__main__":
    B, S, E, H = 2, 8, 32, 4
    key = jax.random.PRNGKey(0)
    kx, k1, k2, k3, k4 = jax.random.split(key, 5)

    x = jax.random.normal(kx, (B, S, E), dtype=jnp.float32)
    w_qkv = jax.random.normal(k1, (E, 3 * E), dtype=jnp.float32) * 0.02
    b_qkv = jax.random.normal(k2, (3 * E,), dtype=jnp.float32) * 0.02
    w_proj = jax.random.normal(k3, (E, E), dtype=jnp.float32) * 0.02
    b_proj = jax.random.normal(k4, (E,), dtype=jnp.float32) * 0.02

    y_ref, (k_r, v_r) = _reference(x, w_qkv, b_qkv, w_proj, b_proj, H)

    # f32 path, fused output projection.
    y, (kc, vc) = causal_self_attention(x, w_qkv, b_qkv, w_proj, b_proj,
                                        num_heads=H)
    jax.block_until_ready((y, kc, vc))
    assert y.shape == (B, S, E) and kc.shape == (B, H, S, E // H)
    assert jnp.allclose(y, y_ref, atol=1e-3, rtol=1e-3), "output mismatch (fused)"
    assert jnp.allclose(kc, k_r, atol=1e-4, rtol=1e-4), "k cache mismatch"
    assert jnp.allclose(vc, v_r, atol=1e-4, rtol=1e-4), "v cache mismatch"

    # f32 path, un-fused output projection (the large-E / v7x path).
    y_u, _ = causal_self_attention(x, w_qkv, b_qkv, w_proj, b_proj,
                                   num_heads=H, fuse_proj=False)
    jax.block_until_ready(y_u)
    assert jnp.allclose(y_u, y_ref, atol=1e-3, rtol=1e-3), "output mismatch (un-fused)"

    # f32 path, sequence length without a friendly divisor -> padding path.
    S2 = 12
    x2 = jax.random.normal(kx, (B, S2, E), dtype=jnp.float32)
    y2_ref, (k2_r, v2_r) = _reference(x2, w_qkv, b_qkv, w_proj, b_proj, H)
    y2, (kc2, vc2) = causal_self_attention(x2, w_qkv, b_qkv, w_proj, b_proj,
                                           num_heads=H)
    jax.block_until_ready((y2, kc2, vc2))
    assert y2.shape == (B, S2, E) and kc2.shape == (B, H, S2, E // H)
    assert jnp.allclose(y2, y2_ref, atol=1e-3, rtol=1e-3), "output mismatch (padded)"
    assert jnp.allclose(kc2, k2_r, atol=1e-4, rtol=1e-4), "k cache mismatch (padded)"
    assert jnp.allclose(vc2, v2_r, atol=1e-4, rtol=1e-4), "v cache mismatch (padded)"

    # bf16 MXU path (f32 accumulation / softmax) — looser tolerance.
    y_bf, _ = causal_self_attention(x, w_qkv, b_qkv, w_proj, b_proj,
                                    num_heads=H, compute_dtype=jnp.bfloat16)
    jax.block_until_ready(y_bf)
    assert jnp.allclose(y_bf.astype(jnp.float32), y_ref,
                        atol=2e-2, rtol=2e-2), "bf16 output mismatch"

    print("KERNEL_OK")
</pallas_src>

<mosaic_0001>
module attributes {stable_mosaic.version = 11 : i64} {
  func.func @_linear_kernel(%arg0: i32, %arg1: i32, %arg2: memref<16x32xf32, #tpu.memory_space<vmem>>, %arg3: memref<32x96xf32, #tpu.memory_space<vmem>>, %arg4: memref<1x96xf32, #tpu.memory_space<vmem>>, %arg5: memref<16x96xf32, #tpu.memory_space<vmem>>) attributes {dimension_semantics = [#tpu.dimension_semantics<parallel>, #tpu.dimension_semantics<parallel>], iteration_bounds = array<i64: 1, 1>, scalar_prefetch = 0 : i64, scratch_operands = 0 : i64, tpu.core_type = #tpu.core_type<tc>, window_params = [{transform_indices = @transform_0, window_bounds = array<i64: 16, 32>}, {transform_indices = @transform_1, window_bounds = array<i64: 32, 96>}, {transform_indices = @transform_2, window_bounds = array<i64: 1, 96>}, {transform_indices = @transform_3, window_bounds = array<i64: 16, 96>}]} {
    %c0 = arith.constant 0 : index
    %c0_0 = arith.constant 0 : index
    %0 = vector.load %arg2[%c0, %c0_0] : memref<16x32xf32, #tpu.memory_space<vmem>>, vector<16x32xf32>
    %c0_1 = arith.constant 0 : index
    %c0_2 = arith.constant 0 : index
    %1 = vector.load %arg3[%c0_1, %c0_2] : memref<32x96xf32, #tpu.memory_space<vmem>>, vector<32x96xf32>
    %cst = arith.constant dense<0.000000e+00> : vector<16x96xf32>
    %2 = tpu.matmul %0, %1, %cst {dimension_numbers = #tpu.dot_dimension_numbers<[1], [0], [0], [1], [0, 0, 1, 1], [], []>} : vector<16x32xf32>, vector<32x96xf32>, vector<16x96xf32> -> vector<16x96xf32>
    %c0_3 = arith.constant 0 : index
    %c0_4 = arith.constant 0 : index
    %3 = vector.load %arg4[%c0_3, %c0_4] : memref<1x96xf32, #tpu.memory_space<vmem>>, vector<1x96xf32>
    %4 = vector.broadcast %3 : vector<1x96xf32> to vector<16x96xf32>
    %5 = arith.addf %2, %4 : vector<16x96xf32>
    %c0_5 = arith.constant 0 : index
    %c0_6 = arith.constant 0 : index
    %6 = vector.load %arg5[%c0_5, %c0_6] : memref<16x96xf32, #tpu.memory_space<vmem>>, vector<16x96xf32>
    tpu.vector_store %arg5[%c0_5, %c0_6], %5 {strides = array<i32>} : memref<16x96xf32, #tpu.memory_space<vmem>>, vector<16x96xf32>,
    return
  }
  func.func @transform_0(%arg0: i32, %arg1: i32) -> (i32, i32) {
    %c0_i32 = arith.constant 0 : i32
    %c0_i32_0 = arith.constant 0 : i32
    return %arg0, %c0_i32 : i32, i32
  }
  func.func @transform_1(%arg0: i32, %arg1: i32) -> (i32, i32) {
    %c0_i32 = arith.constant 0 : i32
    %c0_i32_0 = arith.constant 0 : i32
    return %c0_i32, %arg1 : i32, i32
  }
  func.func @transform_2(%arg0: i32, %arg1: i32) -> (i32, i32) {
    %c0_i32 = arith.constant 0 : i32
    %c0_i32_0 = arith.constant 0 : i32
    return %c0_i32, %arg1 : i32, i32
  }
  func.func @transform_3(%arg0: i32, %arg1: i32) -> (i32, i32) {
    %c0_i32 = arith.constant 0 : i32
    return %arg0, %arg1 : i32, i32
  }
}

</mosaic_0001>

<bundles_post_ra>
// kernel: tpu_custom_call.1
= control target key start
LH: loop header
LB: loop body
LE: loop exit
PB: predicated region body
PF: predicated region fallthrough
CT: control target
= control target key end

     0   :  { %8 = vsyncpa [#allocation3], 0  ;;  %s298_s0 = inlined_call_operand.hbm [shape: f32[16,32], index: 0, kind: input, shape index: {}]   ;;  %s299_s1 = inlined_call_operand.hbm [shape: f32[32,96], index: 1, kind: input, shape index: {}]   ;;  %s300_s2 = inlined_call_operand.vmem [shape: f32[1,96], index: 2, kind: input, shape index: {}]   ;;  %s301_s3 = inlined_call_operand.hbm [shape: f32[16,96], index: 3, kind: output, shape index: {}]  }
   0x1   :  { %9 = vsyncpa [#allocation6], 0 }
   0x2   :  { %10 = vsyncpa [#allocation4], 0  ;;  %s250_s12 = smov [#allocation2]  }
   0x3   :  { %s16_s13 = sshll.u32 %s250_s12, 4  ;;  %s17_s13 = int_to_ptr.vmem [resolvable:$true] %s16_s13 }
   0x4   :  { %s192_s14 = scalar_lea.vmem %s17_s13, 256  ;;  %p197_p1 = scmp.lt.s32.totalorder %s17_s13, %s17_s13 }
   0x5   :  { %p193_p0 = scmp.ne.s32.totalorder %s17_s13, %s192_s14  ;;  %p198_p2 = scmp.lt.s32.totalorder %s192_s14, %s192_s14 }
   0x7   :  { %p199_p3 = por %p198_p2, %p197_p1 }
   0x9   :  { %p200_p4 = pnand %p199_p3, %p193_p0 }
   0xb   :  { %203 = shalt.err (!%p200_p4)
}
   0xc   :  { %s251_s15 = smov 128   ;;  %s252_s16 = smov 8  }
   0xd   :  { %22 = dma.hbm_to_vmem [thread:$0]  %s298_s0, 256, %s17_s13, [#allocation3], %s251_s15, %s251_s15, %s252_s16  }
   0xe   :  { %s253_s19 = smov [#allocation5]  }
   0xf   :  { %s28_s20 = sshll.u32 %s253_s19, 4  ;;  %s29_s20 = int_to_ptr.vmem [resolvable:$true] %s28_s20 }
  0x10   :  { %s212_s21 = scalar_lea.vmem %s29_s20, 512  ;;  %p217_p6 = scmp.lt.s32.totalorder %s29_s20, %s29_s20 }
  0x11   :  { %p213_p5 = scmp.ne.s32.totalorder %s29_s20, %s212_s21  ;;  %p218_p7 = scmp.lt.s32.totalorder %s212_s21, %s212_s21 }
  0x13   :  { %p219_p8 = por %p218_p7, %p217_p6 }
  0x15   :  { %p220_p9 = pnand %p219_p8, %p213_p5 }
  0x17   :  { %223 = shalt.err (!%p220_p9)
}
  0x18   :  { %34 = dma.hbm_to_vmem [thread:$0]  %s299_s1, 512, %s29_s20, [#allocation6], %s251_s15, %s251_s15, %s252_s16  }
  0x19   :  { %244 = dma.done.wait [#allocation3], 256  }
  0x1a   :  { %245 = vsyncadd [#allocation3], 4294967040 }
  0x1b   :  { %246 = dma.done.wait [#allocation6], 512  }
  0x1c   :  { %247 = vsyncadd [#allocation6], 4294966784  ;;  %vm56_vm0 = vcmask 261120   ;;  %v48_v0 = vld [vmem:[#allocation5 + $0x18] sm:$0xff]  ;;  %v47_v1 = vld [vmem:[#allocation5 + $0x10] sm:$0xff]  ;;  %vm138_vm1 = vcmask 785408  }
  0x1d   :  { %168 = vmatprep.subr.mxu0 %v48_v0  ;;  %v43_v2 = vld [vmem:[#allocation2] sm:$0xff]  ;;  %v46_v3 = vld [vmem:[#allocation5 + $0x8] sm:$0xff]  ;;  %v45_v4 = vld [vmem:[#allocation5] sm:$0xff]  ;;  %s254_s24 = smov [#allocation7]  }
  0x1e   :  { %169 = vmatpush3.msra.mxu0 %v48_v0  ;;  %176 = vmatprep.mubr.msk.f32.mxu0 %vm56_vm0, %v43_v2  ;;  %v44_v5 = vld [vmem:[#allocation2 + $0x8] sm:$0xff]  ;;  %v159_v6 = vld [vmem:[%s300_s2] ss:$0 sm:$0xff]  ;;  %s146_s25 = sshll.u32 %s254_s24, 4  ;;  %s147_s25 = int_to_ptr.vmem [resolvable:$true] %s146_s25 }
  0x1f   :  { %170 = vmatprep.subr.mxu0 %v47_v1  ;;  %s224_s26 = scalar_lea.vmem %s147_s25, 256  ;;  %p229_p11 = scmp.lt.s32.totalorder %s147_s25, %s147_s25 }
  0x20   :  { %171 = vmatpush3.msra.mxu0 %v47_v1  ;;  %p225_p10 = scmp.ne.s32.totalorder %s147_s25, %s224_s26  ;;  %p230_p12 = scmp.lt.s32.totalorder %s224_s26, %s224_s26 }
  0x21   :  { %172 = vmatprep.subr.mxu0 %v46_v3 }
  0x22   :  { %173 = vmatpush3.msra.mxu0 %v46_v3  ;;  %p231_p13 = por %p230_p12, %p229_p11 }
  0x23   :  { %174 = vmatprep.subr.mxu0 %v45_v4 }
  0x24   :  { %175 = vmatpush3.msra.mxu0 %v45_v4  ;;  %p232_p0 = pnand %p231_p13, %p225_p10 }
  0x25   :  { %177 = vmatmul.mubr.msk.f32.vlgmr.msra.gmra.mxu0 %vm56_vm0, %v44_v5 }
  0xe5   :  { %v178_v7 = vpop.f32.mrf.mxu0 }
  0xe6   :  { %v135_v8 = vadd.f32 %v178_v7, %v159_v6 }
  0xe7   :  { %v129_v9 = vpop.f32.mrf.mxu0 }
  0xe8   :  { %v130_v10 = vadd.f32 %v159_v6, %v129_v9  ;;  %140 = vst.msk [vmem:[#allocation7 + $0x8] sm:$0xff] %vm138_vm1, %v135_v8 }
  0xea   :  { %139 = vst.msk [vmem:[#allocation7] sm:$0xff] %vm138_vm1, %v130_v10 }
  0xeb   :  { %235 = shalt.err (!%p232_p0)
}
  0xec   :  { %152 = dma.vmem_to_hbm [thread:$0]  %s147_s25, 256, %s301_s3, [#allocation4], %s251_s15, %s251_s15, %s252_s16  }
  0xed   :  { %248 = dma.done.wait [#allocation4], 256  }
  0xee   :  { %249 = vsyncadd [#allocation4], 4294967040 }
  0xef   :  { %156 = vsyncpa [#allocation3], 1 }
  0xf0   :  { %157 = vsyncpa [#allocation6], 1 }
  0xf1   :  { %158 = vsyncpa [#allocation4], 1 }

</bundles_post_ra>
